<compile_context>
chip_gen: v5e
topology: v5e:2x2
jax: 0.10.0
libtpu: 0.0.40
codegen_flags: <defaults>
</compile_context>

<pallas_src>
import functools
import math

import jax
import jax.numpy as jnp
from jax import lax
from jax.experimental import pallas as pl
from jax.experimental.pallas import tpu as pltpu


# ---------------------------------------------------------------------------
# Per-tile gate math (runs inside the kernel body)
# ---------------------------------------------------------------------------
def _gate_tile(x, wt, *, n_experts, top_k, need_scores):
    """x: (tile_s, H) any float dtype, wt: (H, E_pad) f32.

    Returns (packed, scores): packed is a lane-dense (tile_s, 128) f32 block
    holding [top-k softmax weights | top-k indices (as f32) | zeros]; scores is
    the full (tile_s, E_pad) softmax only when need_scores.
    """
    x = x.astype(jnp.float32)
    ts = x.shape[0]
    e_pad = wt.shape[-1]

    logits = jnp.dot(x, wt, preferred_element_type=jnp.float32,
                     precision=lax.Precision.HIGHEST)            # (ts, E_pad) f32

    # (1, E_pad) comparand; broadcast against (ts, ...) — no full-tile int32 temp.
    col = lax.broadcasted_iota(jnp.int32, (1, e_pad), 1)
    if e_pad > n_experts:                                        # mask lane padding
        logits = jnp.where(col < n_experts, logits, -jnp.inf)

    # softmax pieces (f32).  exp(-inf) = 0 for padded experts.
    m = jnp.max(logits, axis=-1, keepdims=True)
    e = jnp.exp(logits - m)
    recip = 1.0 / jnp.sum(e, axis=-1, keepdims=True)             # exact divide

    # Iterative top-k on e (same ordering as the softmax scores; ties -> lowest
    # index, matching jax.lax.top_k).  K is a small compile-time constant.
    work = e
    top_vals, top_ids = [], []
    for _ in range(top_k):
        mx = jnp.max(work, axis=-1, keepdims=True)
        idx = jnp.min(jnp.where(work == mx, col, e_pad), axis=-1, keepdims=True)
        top_vals.append(mx)
        top_ids.append(idx)
        work = jnp.where(col == idx, -1.0, work)                 # knock out winner

    top_e = jnp.concatenate(top_vals, axis=-1)                   # (ts, K)
    top_w = top_e * recip                                        # softmax probs of winners
    ids_f = jnp.concatenate(top_ids, axis=-1).astype(jnp.float32)

    packed = jnp.concatenate(
        [top_w, ids_f, jnp.zeros((ts, 128 - 2 * top_k), jnp.float32)], axis=-1)

    scores = e * recip if need_scores else None                  # full tile only if needed
    return packed, scores


# ---------------------------------------------------------------------------
# Kernels
# ---------------------------------------------------------------------------
def _moe_gate_kernel_scores(x_ref, wt_ref, packed_ref, ssum_ref, *,
                            n_experts, top_k, seq_len):
    t = pl.program_id(1)
    tile_s = x_ref.shape[1]

    packed, scores = _gate_tile(x_ref[0], wt_ref[...],
                                n_experts=n_experts, top_k=top_k,
                                need_scores=True)
    packed_ref[0] = packed

    # Per-batch score sum (for the aux loss), masking rows past the true seq
    # length in a ragged last tile.  Accumulated across the seq-tile axis.
    row = lax.broadcasted_iota(jnp.int32, (tile_s, 1), 0)
    valid = (t * tile_s + row) < seq_len
    part = jnp.sum(jnp.where(valid, scores, 0.0), axis=0, keepdims=True)  # (1, E_pad)

    @pl.when(t == 0)
    def _init():
        ssum_ref[...] = jnp.zeros_like(ssum_ref)

    ssum_ref[...] += part[None]


def _moe_gate_kernel_noscores(x_ref, wt_ref, packed_ref, *, n_experts, top_k):
    packed, _ = _gate_tile(x_ref[0], wt_ref[...],
                           n_experts=n_experts, top_k=top_k, need_scores=False)
    packed_ref[0] = packed


# ---------------------------------------------------------------------------
# Tile / VMEM sizing
# ---------------------------------------------------------------------------
def _vmem_tile_bytes(tile_s, h, e_pad, x_itemsize, need_scores):
    b = 2 * tile_s * h * x_itemsize        # x tile, double-buffered
    b += 2 * h * e_pad * 4                 # gate weight (f32) pipeline buffers
    b += 2 * tile_s * 128 * 4              # lane-dense packed top-k output
    b += 4 * tile_s * e_pad * 4            # in-kernel f32 temporaries (logits/e/work/scores)
    if need_scores:
        b += 2 * 8 * e_pad * 4             # score-sum accumulator block
    return b


def _pick_tile_and_vmem(seq_len, h, e_pad, x_itemsize, need_scores):
    try:
        vmem_cap = int(pltpu.get_tpu_info().vmem_capacity_bytes)
    except Exception:
        vmem_cap = 64 << 20                # conservative default (v7x per-TC size)
    if vmem_cap >= (96 << 20):             # v5e / v6e: 128 MiB VMEM per core
        budget, hard_cap = 80 << 20, 100 << 20
    else:                                  # v7x: 64 MiB per TensorCore
        budget, hard_cap = 36 << 20, 48 << 20

    tile = 1024
    while tile > 8 and _vmem_tile_bytes(tile, h, e_pad, x_itemsize,
                                        need_scores) > budget:
        tile //= 2
    if tile >= seq_len:
        tile = seq_len                     # single block per batch row
    used = _vmem_tile_bytes(tile, h, e_pad, x_itemsize, need_scores)
    vmem_limit = int(min(hard_cap, max(32 << 20, used + (8 << 20))))
    return tile, vmem_limit


# ---------------------------------------------------------------------------
# Wrapper (matches MoEGate.forward semantics)
# ---------------------------------------------------------------------------
def moe_gate_forward(hidden_states, weight, *, top_k, norm_topk_prob=False,
                     alpha=0.02, seq_aux=True, training=True, tile_s=None):
    """hidden_states: [B, S, H]; weight: [E, H] (nn.Linear-style).

    Returns (topk_idx [T,K] int32, topk_weight [T,K] f32, aux_loss or None)
    with T = B*S, exactly like the PyTorch MoEGate.forward.
    """
    bsz, seq_len, h = hidden_states.shape
    n_experts = weight.shape[0]
    assert n_experts < (1 << 24), "expert indices must round-trip exactly through f32"
    assert 2 * top_k <= 128, "packed top-k output assumes 2*K <= 128 lanes"
    T = bsz * seq_len
    e_pad = ((n_experts + 127) // 128) * 128     # lane-dense expert axis
    need_scores = bool(training and alpha > 0.0)
    x_itemsize = jnp.dtype(hidden_states.dtype).itemsize

    # Gate weight: (E, H) -> (H, E_pad) f32.  Tiny one-off op (E*H elements).
    wt = weight.astype(jnp.float32).T
    if e_pad > n_experts:
        wt = jnp.pad(wt, ((0, 0), (0, e_pad - n_experts)))

    if tile_s is None:
        tile_s, vmem_limit = _pick_tile_and_vmem(seq_len, h, e_pad, x_itemsize,
                                                 need_scores)
    else:
        tile_s = min(tile_s, seq_len)
        vmem_limit = int(min(100 << 20, max(
            32 << 20,
            _vmem_tile_bytes(tile_s, h, e_pad, x_itemsize, need_scores) + (8 << 20))))

    tiles = pl.cdiv(seq_len, tile_s)
    grid = (bsz, tiles)

    if need_scores:
        kernel = functools.partial(_moe_gate_kernel_scores,
                                   n_experts=n_experts, top_k=top_k,
                                   seq_len=seq_len)
    else:
        kernel = functools.partial(_moe_gate_kernel_noscores,
                                   n_experts=n_experts, top_k=top_k)

    out_shape = [jax.ShapeDtypeStruct((bsz, seq_len, 128), jnp.float32)]
    out_specs = [pl.BlockSpec((1, tile_s, 128), lambda b, t: (b, t, 0))]
    if need_scores:
        out_shape.append(jax.ShapeDtypeStruct((bsz, 1, e_pad), jnp.float32))
        # Constant block index across t -> resident accumulator (seq axis is
        # "arbitrary"); batch axis stays "parallel" for megacore sharding.
        out_specs.append(pl.BlockSpec((1, 1, e_pad), lambda b, t: (b, 0, 0)))

    in_specs = [
        pl.BlockSpec((1, tile_s, h), lambda b, t: (b, t, 0)),   # activation stream
        pl.BlockSpec((h, e_pad), lambda b, t: (0, 0)),          # gate weight (grid-invariant)
    ]

    bytes_accessed = (T * h * x_itemsize + h * e_pad * 4 + T * 128 * 4
                      + (bsz * e_pad * 4 if need_scores else 0))
    cost = pl.CostEstimate(flops=2 * T * h * e_pad,
                           transcendentals=T * e_pad,
                           bytes_accessed=bytes_accessed)

    semantics = ("parallel", "arbitrary") if need_scores else ("parallel", "parallel")

    outs = pl.pallas_call(
        kernel,
        out_shape=tuple(out_shape),
        grid_spec=pltpu.PrefetchScalarGridSpec(
            num_scalar_prefetch=0,
            grid=grid,
            in_specs=in_specs,
            out_specs=tuple(out_specs)),
        compiler_params=pltpu.CompilerParams(
            dimension_semantics=semantics,
            vmem_limit_bytes=vmem_limit),
        cost_estimate=cost,
    )(hidden_states, wt)

    packed = outs[0]                                        # (B, S, 128)
    topk_weight = packed[..., :top_k].reshape(T, top_k)
    topk_idx = packed[..., top_k:2 * top_k].reshape(T, top_k).astype(jnp.int32)

    if top_k > 1 and norm_topk_prob:
        denom = topk_weight.sum(axis=-1, keepdims=True) + 1e-20
        topk_weight = topk_weight / denom

    aux_loss = None
    if need_scores:
        # TODO(synk): aux-loss scatter / one-hot glue stays in plain JAX (tiny).
        ssum = outs[1][:, 0, :n_experts]                    # (B, E) score sums over seq
        idx_for_aux = topk_idx.reshape(bsz, seq_len * top_k)
        if seq_aux:
            ce = jnp.zeros((bsz, n_experts), jnp.float32)
            ce = ce.at[jnp.arange(bsz)[:, None], idx_for_aux].add(1.0)
            ce = ce / (seq_len * top_k / n_experts)
            mean_scores = ssum / seq_len                    # scores.view(B,S,E).mean(1)
            aux_loss = (ce * mean_scores).sum(axis=1).mean() * alpha
        else:
            mask_ce = jax.nn.one_hot(idx_for_aux.reshape(-1), n_experts,
                                     dtype=jnp.float32)
            ce = mask_ce.mean(0)
            Pi = ssum.sum(axis=0) / T                       # scores.mean(0)
            fi = ce * n_experts
            aux_loss = (Pi * fi).sum() * alpha

    return topk_idx, topk_weight, aux_loss


# ---------------------------------------------------------------------------
# Demo / self-check
# ---------------------------------------------------------------------------
if __name__ == "__main__":
    # Small shapes consistent with the module's forward (B, S, H), gate over E.
    B, S, H = 2, 8, 64
    E, K = 32, 3          # n_routed_experts, num_experts_per_tok

    key = jax.random.PRNGKey(0)
    k_x, k_w = jax.random.split(key)

    hidden_states = jax.random.normal(k_x, (B, S, H), dtype=jnp.float32)

    # kaiming_uniform_(a=sqrt(5)) -> U(-1/sqrt(fan_in), 1/sqrt(fan_in)), fan_in = H
    bound = 1.0 / math.sqrt(H)
    weight = jax.random.uniform(k_w, (E, H), dtype=jnp.float32,
                                minval=-bound, maxval=bound)

    topk_idx, topk_weight, aux_loss = moe_gate_forward(
        hidden_states, weight, top_k=K, norm_topk_prob=False,
        alpha=0.02, seq_aux=True, training=True)
    jax.block_until_ready((topk_idx, topk_weight, aux_loss))

    # Pure-JAX f32 reference (same math as the PyTorch module).
    x_ref = hidden_states.reshape(-1, H)
    logits_ref = jnp.dot(x_ref, weight.T, precision=lax.Precision.HIGHEST)
    scores_ref = jax.nn.softmax(logits_ref, axis=-1)
    vals_ref, idx_ref = jax.lax.top_k(scores_ref, K)

    assert jnp.array_equal(topk_idx, idx_ref.astype(jnp.int32)), "topk indices mismatch"
    assert jnp.allclose(topk_weight, vals_ref, rtol=1e-5, atol=1e-6), "topk weights mismatch"

    # Reference seq-aux loss.
    idx_for_aux_ref = idx_ref.reshape(B, S * K)
    ce_ref = jnp.zeros((B, E), jnp.float32)
    ce_ref = ce_ref.at[jnp.arange(B)[:, None], idx_for_aux_ref].add(1.0)
    ce_ref = ce_ref / (S * K / E)
    aux_ref = (ce_ref * scores_ref.reshape(B, S, E).mean(axis=1)).sum(axis=1).mean() * 0.02

    assert aux_loss is not None and bool(jnp.isfinite(aux_loss))
    assert jnp.allclose(aux_loss, aux_ref, rtol=1e-4, atol=1e-6), "aux loss mismatch"

    print("KERNEL_OK")
</pallas_src>

<mosaic_0001>
module attributes {stable_mosaic.version = 11 : i64} {
  func.func @_moe_gate_kernel_scores(%arg0: i32, %arg1: i32, %arg2: memref<1x8x64xf32, #tpu.memory_space<vmem>>, %arg3: memref<64x128xf32, #tpu.memory_space<vmem>>, %arg4: memref<1x8x128xf32, #tpu.memory_space<vmem>>, %arg5: memref<1x1x128xf32, #tpu.memory_space<vmem>>) attributes {dimension_semantics = [#tpu.dimension_semantics<parallel>, #tpu.dimension_semantics<arbitrary>], iteration_bounds = array<i64: 2, 1>, scalar_prefetch = 0 : i64, scratch_operands = 0 : i64, tpu.core_type = #tpu.core_type<tc>, window_params = [{transform_indices = @transform_0, window_bounds = array<i64: 1, 8, 64>}, {pipeline_mode = #tpu.pipeline_mode<synchronous>, transform_indices = @transform_1, window_bounds = array<i64: 64, 128>}, {transform_indices = @transform_2, window_bounds = array<i64: 1, 8, 128>}, {transform_indices = @transform_3, window_bounds = array<i64: 1, 1, 128>}]} {
    %c0 = arith.constant 0 : index
    %c0_0 = arith.constant 0 : index
    %c0_1 = arith.constant 0 : index
    %0 = vector.load %arg2[%c0, %c0_0, %c0_1] : memref<1x8x64xf32, #tpu.memory_space<vmem>>, vector<1x8x64xf32>
    %1 = vector.shape_cast %0 : vector<1x8x64xf32> to vector<8x64xf32>
    %c0_2 = arith.constant 0 : index
    %c0_3 = arith.constant 0 : index
    %2 = vector.load %arg3[%c0_2, %c0_3] : memref<64x128xf32, #tpu.memory_space<vmem>>, vector<64x128xf32>
    %cst = arith.constant dense<0.000000e+00> : vector<8x128xf32>
    %3 = tpu.matmul %1, %2, %cst {dimension_numbers = #tpu.dot_dimension_numbers<[1], [0], [0], [1], [0, 0, 1, 1], [], []>, precision = #tpu.contract_precision<fp32>} : vector<8x64xf32>, vector<64x128xf32>, vector<8x128xf32> -> vector<8x128xf32>
    %4 = tpu.iota {dimensions = array<i32: 1>} : vector<1x128xi32>
    %c32_i32 = arith.constant 32 : i32
    %5 = vector.broadcast %c32_i32 : i32 to vector<1x128xi32>
    %6 = arith.cmpi slt, %4, %5 : vector<1x128xi32>
    %cst_4 = arith.constant 0xFF800000 : f32
    %7 = vector.shape_cast %6 : vector<1x128xi1> to vector<1x128xi1>
    %8 = vector.broadcast %7 : vector<1x128xi1> to vector<8x128xi1>
    %9 = vector.broadcast %cst_4 : f32 to vector<8x128xf32>
    %10 = arith.select %8, %3, %9 : vector<8x128xi1>, vector<8x128xf32>
    %cst_5 = arith.constant dense<0xFF800000> : vector<8xf32>
    %11 = vector.multi_reduction <maximumf>, %10, %cst_5 [1] : vector<8x128xf32> to vector<8xf32>
    %12 = vector.shape_cast %11 : vector<8xf32> to vector<8x1xf32>
    %13 = vector.broadcast %12 : vector<8x1xf32> to vector<8x128xf32>
    %14 = arith.subf %10, %13 : vector<8x128xf32>
    %15 = math.exp %14 : vector<8x128xf32>
    %cst_6 = arith.constant dense<0.000000e+00> : vector<8xf32>
    %16 = vector.multi_reduction <add>, %15, %cst_6 [1] : vector<8x128xf32> to vector<8xf32>
    %17 = vector.shape_cast %16 : vector<8xf32> to vector<8x1xf32>
    %cst_7 = arith.constant 1.000000e+00 : f32
    %18 = vector.broadcast %cst_7 : f32 to vector<8x1xf32>
    %19 = arith.divf %18, %17 : vector<8x1xf32>
    %cst_8 = arith.constant dense<0xFF800000> : vector<8xf32>
    %20 = vector.multi_reduction <maximumf>, %15, %cst_8 [1] : vector<8x128xf32> to vector<8xf32>
    %21 = vector.shape_cast %20 : vector<8xf32> to vector<8x1xf32>
    %22 = vector.broadcast %21 : vector<8x1xf32> to vector<8x128xf32>
    %23 = arith.cmpf oeq, %15, %22 : vector<8x128xf32>
    %c128_i32 = arith.constant 128 : i32
    %24 = vector.shape_cast %4 : vector<1x128xi32> to vector<1x128xi32>
    %25 = vector.broadcast %24 : vector<1x128xi32> to vector<8x128xi32>
    %26 = vector.broadcast %c128_i32 : i32 to vector<8x128xi32>
    %27 = arith.select %23, %25, %26 : vector<8x128xi1>, vector<8x128xi32>
    %cst_9 = arith.constant dense<2147483647> : vector<8xi32>
    %28 = vector.multi_reduction <minsi>, %27, %cst_9 [1] : vector<8x128xi32> to vector<8xi32>
    %29 = vector.shape_cast %28 : vector<8xi32> to vector<8x1xi32>
    %30 = vector.broadcast %4 : vector<1x128xi32> to vector<8x128xi32>
    %31 = vector.broadcast %29 : vector<8x1xi32> to vector<8x128xi32>
    %32 = arith.cmpi eq, %30, %31 : vector<8x128xi32>
    %cst_10 = arith.constant -1.000000e+00 : f32
    %33 = vector.broadcast %cst_10 : f32 to vector<8x128xf32>
    %34 = arith.select %32, %33, %15 : vector<8x128xi1>, vector<8x128xf32>
    %cst_11 = arith.constant dense<0xFF800000> : vector<8xf32>
    %35 = vector.multi_reduction <maximumf>, %34, %cst_11 [1] : vector<8x128xf32> to vector<8xf32>
    %36 = vector.shape_cast %35 : vector<8xf32> to vector<8x1xf32>
    %37 = vector.broadcast %36 : vector<8x1xf32> to vector<8x128xf32>
    %38 = arith.cmpf oeq, %34, %37 : vector<8x128xf32>
    %c128_i32_12 = arith.constant 128 : i32
    %39 = vector.shape_cast %4 : vector<1x128xi32> to vector<1x128xi32>
    %40 = vector.broadcast %39 : vector<1x128xi32> to vector<8x128xi32>
    %41 = vector.broadcast %c128_i32_12 : i32 to vector<8x128xi32>
    %42 = arith.select %38, %40, %41 : vector<8x128xi1>, vector<8x128xi32>
    %cst_13 = arith.constant dense<2147483647> : vector<8xi32>
    %43 = vector.multi_reduction <minsi>, %42, %cst_13 [1] : vector<8x128xi32> to vector<8xi32>
    %44 = vector.shape_cast %43 : vector<8xi32> to vector<8x1xi32>
    %45 = vector.broadcast %4 : vector<1x128xi32> to vector<8x128xi32>
    %46 = vector.broadcast %44 : vector<8x1xi32> to vector<8x128xi32>
    %47 = arith.cmpi eq, %45, %46 : vector<8x128xi32>
    %cst_14 = arith.constant -1.000000e+00 : f32
    %48 = vector.broadcast %cst_14 : f32 to vector<8x128xf32>
    %49 = arith.select %47, %48, %34 : vector<8x128xi1>, vector<8x128xf32>
    %cst_15 = arith.constant dense<0xFF800000> : vector<8xf32>
    %50 = vector.multi_reduction <maximumf>, %49, %cst_15 [1] : vector<8x128xf32> to vector<8xf32>
    %51 = vector.shape_cast %50 : vector<8xf32> to vector<8x1xf32>
    %52 = vector.broadcast %51 : vector<8x1xf32> to vector<8x128xf32>
    %53 = arith.cmpf oeq, %49, %52 : vector<8x128xf32>
    %c128_i32_16 = arith.constant 128 : i32
    %54 = vector.shape_cast %4 : vector<1x128xi32> to vector<1x128xi32>
    %55 = vector.broadcast %54 : vector<1x128xi32> to vector<8x128xi32>
    %56 = vector.broadcast %c128_i32_16 : i32 to vector<8x128xi32>
    %57 = arith.select %53, %55, %56 : vector<8x128xi1>, vector<8x128xi32>
    %cst_17 = arith.constant dense<2147483647> : vector<8xi32>
    %58 = vector.multi_reduction <minsi>, %57, %cst_17 [1] : vector<8x128xi32> to vector<8xi32>
    %59 = vector.shape_cast %58 : vector<8xi32> to vector<8x1xi32>
    %60 = tpu.concatenate %21, %36, %51 in 1 : vector<8x1xf32>, vector<8x1xf32>, vector<8x1xf32> -> vector<8x3xf32>
    %61 = vector.broadcast %19 : vector<8x1xf32> to vector<8x3xf32>
    %62 = arith.mulf %60, %61 : vector<8x3xf32>
    %63 = tpu.concatenate %29, %44, %59 in 1 : vector<8x1xi32>, vector<8x1xi32>, vector<8x1xi32> -> vector<8x3xi32>
    %64 = arith.sitofp %63 : vector<8x3xi32> to vector<8x3xf32>
    %cst_18 = arith.constant 0.000000e+00 : f32
    %65 = vector.broadcast %cst_18 : f32 to vector<8x122xf32>
    %66 = tpu.concatenate %62, %64, %65 in 1 : vector<8x3xf32>, vector<8x3xf32>, vector<8x122xf32> -> vector<8x128xf32>
    %67 = vector.broadcast %19 : vector<8x1xf32> to vector<8x128xf32>
    %68 = arith.mulf %15, %67 : vector<8x128xf32>
    %c0_19 = arith.constant 0 : index
    %c0_20 = arith.constant 0 : index
    %c0_21 = arith.constant 0 : index
    %69 = vector.load %arg4[%c0_19, %c0_20, %c0_21] : memref<1x8x128xf32, #tpu.memory_space<vmem>>, vector<1x8x128xf32>
    %70 = vector.shape_cast %69 : vector<1x8x128xf32> to vector<8x128xf32>
    %71 = vector.shape_cast %66 : vector<8x128xf32> to vector<1x8x128xf32>
    tpu.vector_store %arg4[%c0_19, %c0_20, %c0_21], %71 {strides = array<i32>} : memref<1x8x128xf32, #tpu.memory_space<vmem>>, vector<1x8x128xf32>,
    %72 = tpu.iota {dimensions = array<i32: 0>} : vector<8x1xi32>
    %c8_i32 = arith.constant 8 : i32
    %73 = arith.muli %arg1, %c8_i32 : i32
    %74 = vector.broadcast %73 : i32 to vector<8x1xi32>
    %75 = arith.addi %74, %72 : vector<8x1xi32>
    %c8_i32_22 = arith.constant 8 : i32
    %76 = vector.broadcast %c8_i32_22 : i32 to vector<8x1xi32>
    %77 = arith.cmpi slt, %75, %76 : vector<8x1xi32>
    %cst_23 = arith.constant 0.000000e+00 : f32
    %78 = vector.shape_cast %77 : vector<8x1xi1> to vector<8x1xi1>
    %79 = vector.broadcast %78 : vector<8x1xi1> to vector<8x128xi1>
    %80 = vector.broadcast %cst_23 : f32 to vector<8x128xf32>
    %81 = arith.select %79, %68, %80 : vector<8x128xi1>, vector<8x128xf32>
    %cst_24 = arith.constant dense<0.000000e+00> : vector<128xf32>
    %82 = vector.multi_reduction <add>, %81, %cst_24 [0] : vector<8x128xf32> to vector<128xf32>
    %83 = vector.shape_cast %82 : vector<128xf32> to vector<1x128xf32>
    %c0_i32 = arith.constant 0 : i32
    %84 = arith.cmpi eq, %arg1, %c0_i32 : i32
    %85 = arith.extui %84 : i1 to i32
    %c0_i32_25 = arith.constant 0 : i32
    %86 = arith.cmpi ne, %85, %c0_i32_25 : i32
    scf.if %86 {
      %cst_32 = arith.constant 0.000000e+00 : f32
      %91 = vector.broadcast %cst_32 : f32 to vector<1x1x128xf32>
      %c0_33 = arith.constant 0 : index
      %c0_34 = arith.constant 0 : index
      %c0_35 = arith.constant 0 : index
      %92 = vector.load %arg5[%c0_33, %c0_34, %c0_35] : memref<1x1x128xf32, #tpu.memory_space<vmem>>, vector<1x1x128xf32>
      tpu.vector_store %arg5[%c0_33, %c0_34, %c0_35], %91 {strides = array<i32>} : memref<1x1x128xf32, #tpu.memory_space<vmem>>, vector<1x1x128xf32>,
    } else {
    }
    %c0_26 = arith.constant 0 : index
    %c0_27 = arith.constant 0 : index
    %c0_28 = arith.constant 0 : index
    %87 = vector.load %arg5[%c0_26, %c0_27, %c0_28] : memref<1x1x128xf32, #tpu.memory_space<vmem>>, vector<1x1x128xf32>
    %88 = vector.shape_cast %83 : vector<1x128xf32> to vector<1x1x128xf32>
    %89 = arith.addf %87, %88 : vector<1x1x128xf32>
    %c0_29 = arith.constant 0 : index
    %c0_30 = arith.constant 0 : index
    %c0_31 = arith.constant 0 : index
    %90 = vector.load %arg5[%c0_29, %c0_30, %c0_31] : memref<1x1x128xf32, #tpu.memory_space<vmem>>, vector<1x1x128xf32>
    tpu.vector_store %arg5[%c0_29, %c0_30, %c0_31], %89 {strides = array<i32>} : memref<1x1x128xf32, #tpu.memory_space<vmem>>, vector<1x1x128xf32>,
    return
  }
  func.func @transform_0(%arg0: i32, %arg1: i32) -> (i32, i32, i32) {
    %c0_i32 = arith.constant 0 : i32
    %c0_i32_0 = arith.constant 0 : i32
    return %arg0, %arg1, %c0_i32 : i32, i32, i32
  }
  func.func @transform_1(%arg0: i32, %arg1: i32) -> (i32, i32) {
    %c0_i32 = arith.constant 0 : i32
    %c0_i32_0 = arith.constant 0 : i32
    %c0_i32_1 = arith.constant 0 : i32
    return %c0_i32, %c0_i32_0 : i32, i32
  }
  func.func @transform_2(%arg0: i32, %arg1: i32) -> (i32, i32, i32) {
    %c0_i32 = arith.constant 0 : i32
    %c0_i32_0 = arith.constant 0 : i32
    return %arg0, %arg1, %c0_i32 : i32, i32, i32
  }
  func.func @transform_3(%arg0: i32, %arg1: i32) -> (i32, i32, i32) {
    %c0_i32 = arith.constant 0 : i32
    %c0_i32_0 = arith.constant 0 : i32
    %c0_i32_1 = arith.constant 0 : i32
    return %arg0, %c0_i32, %c0_i32_0 : i32, i32, i32
  }
}

</mosaic_0001>

<bundles_post_ra>
// kernel: tpu_custom_call.1
= control target key start
LH: loop header
LB: loop body
LE: loop exit
PB: predicated region body
PF: predicated region fallthrough
CT: control target
= control target key end

     0   :  { %9 = vsyncpa [#allocation3], 0  ;;  %s1340_s0 = inlined_call_operand.hbm [shape: f32[2,8,64], index: 0, kind: input, shape index: {}]   ;;  %s1341_s1 = inlined_call_operand.hbm [shape: f32[64,128], index: 1, kind: input, shape index: {}]   ;;  %s1342_s2 = inlined_call_operand.hbm [shape: f32[2,8,128], index: 2, kind: output, shape index: {0}]   ;;  %s1343_s3 = inlined_call_operand.hbm [shape: f32[2,1,128], index: 3, kind: output, shape index: {1}]  }
   0x1   :  { %11 = vsyncpa [#allocation3 + $0x1], 0 }
   0x2   :  { %12 = vsyncpa [#allocation6], 0 }
   0x3   :  { %13 = vsyncpa [#allocation4], 0 }
   0x4   :  { %15 = vsyncpa [#allocation4 + $0x1], 0 }
   0x5   :  { %16 = vsyncpa [#allocation9], 0 }
   0x6   :  { %18 = vsyncpa [#allocation9 + $0x1], 0  ;;  %s1067_s12 = smov 0   ;;  %s1069_s13 = smov 0  }
   0x7   :  { %s1071_s14 = smov 0   ;;  %s1073_s15 = smov 0  }
   0x8   :  { %s1075_s16 = smov 0   ;;  %s1077_s17 = smov 0  }
   0x9 LB: > { %s761_s18 = sadd.s32 4294967295, %s1040_s17   ;;  %p763_p0 = scmp.ge.s32.totalorder %s1040_s17, 1  ;;  %s1040_s17 = sphi %s1077_s17, %s24_s17   ;;  %s1036_s16 = sphi %s1075_s16, %s1354_s16   ;;  %s1032_s15 = sphi %s1073_s15, %s1353_s15   ;;  %s1028_s14 = sphi %s1071_s14, %s1352_s14   ;;  %s1024_s13 = sphi %s1069_s13, %s1351_s13   ;;  %s1020_s12 = sphi %s1067_s12, %s1350_s12  }
   0xa   : > { %p1099_p1 = scmp.eq.s32.totalorder %s761_s18, 0  ;;  %p144_p2 = scmp.lt.s32.totalorder %s1040_s17, 3 }
   0xb   : > { %s155_s22 = sshll.u32 %s1341_s1, 4  ;;  %s1042_s24 = smov [#allocation5]   ;;  %s156_s22 = int_to_ptr.hbm [resolvable:$true] %s155_s22 }
   0xc   : > { %p1107_p3 = pnand %p763_p0, %p144_p2  ;;  %s157_s25 = sshll.u32 %s1042_s24, 4  ;;  %s158_s25 = int_to_ptr.vmem [resolvable:$true] %s157_s25 }
   0xd   : > { %p765_p6 = scmp.ge.s32.totalorder %s1040_s17, 2  ;;  %s1043_s26 = smov 128  }
   0xe   : > { %p786_p4 = pneg %p1107_p3  ;;  %s1044_s27 = smov 8  }
   0xf   : > { %s762_s28 = sadd.s32 4294967294, %s1040_s17   ;;  %s36_s29 = sadd.s32 1, %s1036_s16 }
  0x10   : > { %p787_p5 = pnand %p786_p4, %p1099_p1  ;;  %s45_s30 = sadd.s32 1, %s1028_s14 }
  0x11   : > { %p38_p7 = scmp.ge.s32.totalorder %s36_s29, 2  ;;  %p52_p8 = scmp.ne.s32.totalorder %s1028_s14, %s1024_s13 }
  0x12   : > { %789 = dma.hbm_to_vmem [thread:$0]  (!%p787_p5), %s156_s22, 1024, %s158_s25, [#allocation6], %s1043_s26, %s1043_s26, %s1044_s27  }
  0x13   : > { %p53_p9 = scmp.eq.s32.totalorder %s1040_s17, 0  ;;  %p58_p10 = scmp.ne.s32.totalorder %s1024_s13, %s1020_s12 }
  0x14   : > { %s1356_s29 = smov (%p38_p7, %s36_s29), 0  ;;  %p105_p13 = scmp.eq.s32.totalorder %s761_s18, 1 }
  0x15   : > { %p1126_p11 = por %p53_p9, %p52_p8  ;;  %p1132_p12 = por %p1099_p1, %p58_p10 }
  0x16   : > { %s40_s6 = ssub.s32 %s1036_s16, %s1356_s29  ;;  %p111_p2 = scmp.eq.s32.totalorder %s762_s28, 1 }
  0x17   : > { %p43_p0 = scmp.eq.s32.totalorder %s40_s6, 0  ;;  %p1138_p4 = por %p105_p13, %p52_p8 }
  0x18   : > { %p802_p5 = scmp.lt.s32.totalorder %s1040_s17, 2  ;;  %p1146_p7 = por %p111_p2, %p58_p10 }
  0x19   : > { %s1144_s8 = scalar_select %p43_p0, %s1028_s14, %s45_s30  }
  0x1a   : > { %s171_s10 = sand.u32 1, %s1028_s14   ;;  %s767_s20 = sshll.u32 %s1036_s16, 3 }
  0x1b   : > { %s766_s11 = sshll.u32 %s171_s10, 3  ;;  %s180_s18 = scalar_lea.hbm %s1340_s0, %s767_s20 }
  0x1c   : > { %s175_s24 = scalar_lea.vmem [#allocation2], %s766_s11  ;;  %s182_s26 = sshll.u32 %s180_s18, 4  ;;  %s183_s26 = int_to_ptr.hbm [resolvable:$true] %s182_s26 }
  0x1d   : > { %s184_s25 = sshll.u32 %s175_s24, 4  ;;  %p791_p8 = pnand %p802_p5, %p1126_p11  ;;  %s185_s25 = int_to_ptr.vmem [resolvable:$true] %s184_s25 }
  0x1e   : > { %s172_s27 = scalar_lea.sflag [#allocation3], %s171_s10  ;;  %193 = sbr.rel (%p1107_p3) target bundleno = 1519 (0x5ef), region = 28 }
  0x1f   : > { %793 = dma.hbm_to_vmem [thread:$0]  (!%p791_p8), %s183_s26, 128, %s185_s25, %s172_s27  }
  0x20   : > { %s1160_s28 = sand.u32 (!%p1107_p3), 1, %s1024_s13  }
  0x21   : > { %s769_s30 = sshll.u32 (!%p1107_p3), %s1160_s28, 3  ;;  %s196_s6 = scalar_lea.sflag (!%p1107_p3), [#allocation3], %s1160_s28 }
  0x22   : > { %s1166_s11 = scalar_lea.vmem (!%p1107_p3), [#allocation2], %s769_s30 }
  0x23   : > { %1003 = dma.done.wait (%p1132_p12), %s196_s6, 128  }
  0x24   : > { %1005 = vsyncadd (%p1132_p12), %s196_s6, 4294967168 }
  0x25   : > { %1007 = dma.done.wait (%p1099_p1), [#allocation6], 1024  }
  0x26   : > { %1009 = vsyncadd (%p1099_p1), [#allocation6], 4294966272  ;;  %v240_v0 = vld [vmem:[#allocation5 + $0x38] sm:$0xff]  ;;  %v239_v1 = vld [vmem:[#allocation5 + $0x30] sm:$0xff]  ;;  %vm241_vm0 = vcmask 523264   ;;  %v482_v61 = vlaneseq  ;;  %s1271_s19 = scalar_lea.vmem [#allocation8], %s1160_s28  ;;  %s638_s5 = scalar_lea.hbm %s1343_s3, %s1032_s15 }
  0x27   : > { %v238_v2 = vld [vmem:[#allocation5 + $0x28] sm:$0xff]  ;;  %v1176_v3 = vand.u32 4294901760, %v240_v0  ;;  %v1178_v4 = vand.u32 4294901760, %v239_v1  ;;  %v237_v6 = vld [vmem:[#allocation5 + $0x20] sm:$0xff]  ;;  %v236_v7 = vld [vmem:[#allocation5 + $0x18] sm:$0xff]  ;;  %vm568_vm10 = vcmask 7168  }
  0x28   : > { %v1180_v5 = vand.u32 4294901760, %v238_v2  ;;  %v235_v8 = vld [vmem:[#allocation5 + $0x10] sm:$0xff]  ;;  %v1182_v9 = vand.u32 4294901760, %v237_v6  ;;  %v1184_v10 = vand.u32 4294901760, %v236_v7  ;;  %v234_v12 = vld [vmem:[#allocation5 + $0x8] sm:$0xff]  ;;  %v233_v13 = vld [vmem:[#allocation5] sm:$0xff] }
  0x29   : > { %v1186_v11 = vand.u32 4294901760, %v235_v8  ;;  %254 = vmatpush.msra.mxu0 %v1176_v3  ;;  %v287_v14 = vsub.f32 %v240_v0, %v1176_v3  ;;  %v1191_v15 = vsub.f32 %v239_v1, %v1178_v4  ;;  %386 = vmatpush.msra.mxu3 %v1176_v3  ;;  %v1197_v17 = vand.u32 4294901760, %v234_v12  ;;  %v232_v32 = vld [vmem:[%s1166_s11] sm:$0xff]  ;;  %s640_s10 = sshll.u32 %s1271_s19, 4  ;;  %s642_s20 = sshll.u32 %s638_s5, 4  ;;  %s641_s10 = int_to_ptr.vmem [resolvable:$true] %s640_s10  ;;  %s643_s20 = int_to_ptr.hbm [resolvable:$true] %s642_s20 }
  0x2a   : > { %v1195_v16 = vsub.f32 %v238_v2, %v1180_v5  ;;  %v1200_v18 = vsub.f32 %v237_v6, %v1182_v9  ;;  %v1203_v19 = vsub.f32 %v236_v7, %v1184_v10  ;;  %v1211_v24 = vand.u32 4294901760, %v233_v13  ;;  %s615_s21 = scalar_lea.sflag [#allocation9], %s1160_s28  ;;  %s936_s22 = sshra.s32 %s643_s20, 4  ;;  %s937_s22 = int_to_ptr.hbm [resolvable:$true] %s936_s22 }
  0x2b   : > { %v1206_v20 = vsub.f32 %v235_v8, %v1186_v11  ;;  %256 = vmatpush.msra.mxu0 %v1178_v4  ;;  %v288_v21 = vand.u32 4294901760, %v287_v14  ;;  %349 = vmatpush.msra.mxu2 %v287_v14  ;;  %v294_v22 = vand.u32 4294901760, %v1191_v15  ;;  %v1216_v26 = vsub.f32 %v234_v12, %v1197_v17  ;;  %s938_s18 = scalar_lea.hbm %s937_s22, 1  ;;  %s942_s26 = scalar_lea.hbm %s1343_s3, 2 }
  0x2c   : > { %v300_v23 = vand.u32 4294901760, %v1195_v16  ;;  %388 = vmatpush.msra.mxu3 %v1178_v4  ;;  %v306_v25 = vand.u32 4294901760, %v1200_v18  ;;  %v312_v30 = vand.u32 4294901760, %v1203_v19  ;;  %v329_v36 = vsub.f32 %v233_v13, %v1211_v24  ;;  %p939_p1 = scmp.ne.s32.totalorder %s937_s22, %s938_s18  ;;  %p943_p10 = scmp.lt.s32.totalorder %s937_s22, %s1343_s3 }
  0x2d   : > { %258 = vmatpush.msra.mxu0 %v1180_v5  ;;  %v289_v27 = vsub.f32 %v287_v14, %v288_v21  ;;  %v295_v28 = vsub.f32 %v1191_v15, %v294_v22  ;;  %352 = vmatpush.msra.mxu2 %v1191_v15  ;;  %v318_v31 = vand.u32 4294901760, %v1206_v20  ;;  %v324_v39 = vand.u32 4294901760, %v1216_v26  ;;  %p944_p11 = scmp.lt.s32.totalorder %s942_s26, %s938_s18 }
  0x2e   : > { %v301_v29 = vsub.f32 %v1195_v16, %v300_v23  ;;  %390 = vmatpush.msra.mxu3 %v1180_v5  ;;  %v307_v35 = vsub.f32 %v1200_v18, %v306_v25  ;;  %v313_v38 = vsub.f32 %v1203_v19, %v312_v30  ;;  %v243_v40 = vsel %vm241_vm0, %v232_v32, 0  ;;  %p940_p3 = pnand %p939_p1, %p1138_p4 }
  0x2f   : > { %v290_v33 = vand.u32 4294901760, %v289_v27  ;;  %260 = vmatpush.msra.mxu0 %v1182_v9  ;;  %v296_v34 = vand.u32 4294901760, %v295_v28  ;;  %355 = vmatpush.msra.mxu2 %v1195_v16  ;;  %v269_v41 = vand.u32 4294901760, %v243_v40  ;;  %v319_v43 = vsub.f32 %v1206_v20, %v318_v31  ;;  %p945_p12 = por %p944_p11, %p943_p10 }
  0x30   : > { %392 = vmatpush.msra.mxu3 %v1182_v9  ;;  %v302_v37 = vand.u32 4294901760, %v301_v29  ;;  %v308_v42 = vand.u32 4294901760, %v307_v35  ;;  %v330_v44 = vand.u32 4294901760, %v329_v36  ;;  %v314_v46 = vand.u32 4294901760, %v313_v38  ;;  %p941_p9 = pneg %p940_p3 }
  0x31   : > { %291 = vmatpush.msra.mxu1 %v290_v33  ;;  %262 = vmatpush.msra.mxu0 %v1184_v10  ;;  %v270_v45 = vsub.f32 %v243_v40, %v269_v41  ;;  %v325_v47 = vsub.f32 %v1216_v26, %v324_v39  ;;  %v320_v49 = vand.u32 4294901760, %v319_v43  ;;  %v483_v0 = vand.u32 127, %v482_v61 }
  0x32   : > { %358 = vmatpush.msra.mxu2 %v1200_v18  ;;  %394 = vmatpush.msra.mxu3 %v1184_v10  ;;  %v331_v50 = vsub.f32 %v329_v36, %v330_v44  ;;  %v1045_v38 = vmov 0.0   ;;  %vm570_vm11 = vcmask 15360   ;;  %p946_p13 = pnand %p945_p12, %p941_p9 }
  0x33   : > { %297 = vmatpush.msra.mxu1 %v296_v34  ;;  %264 = vmatpush.msra.mxu0 %v1186_v11  ;;  %v271_v48 = vand.u32 4294901760, %v270_v45  ;;  %v326_v52 = vand.u32 4294901760, %v325_v47  ;;  %vm484_vm1 = vcmp.lt.s32.totalorder %v483_v0, 32  ;;  %605 = vst [vmem:[%s1271_s19] sm:$0x1] %v1045_v38 }
  0x34   : > { %361 = vmatpush.msra.mxu2 %v1203_v19  ;;  %396 = vmatpush.msra.mxu3 %v1186_v11  ;;  %v332_v54 = vand.u32 4294901760, %v331_v50 }
  0x35   : > { %303 = vmatpush.msra.mxu1 %v302_v37  ;;  %266 = vmatpush.msra.mxu0 %v1197_v17  ;;  %v272_v51 = vsub.f32 %v270_v45, %v271_v48 }
  0x36   : > { %364 = vmatpush.msra.mxu2 %v1206_v20  ;;  %398 = vmatpush.msra.mxu3 %v1197_v17 }
  0x37   : > { %309 = vmatpush.msra.mxu1 %v308_v42  ;;  %268 = vmatpush.msra.mxu0 %v1211_v24  ;;  %v273_v53 = vand.u32 4294901760, %v272_v51 }
  0x38   : > { %367 = vmatpush.msra.mxu2 %v1216_v26  ;;  %400 = vmatpush.msra.mxu3 %v1211_v24 }
  0x39   : > { %419 = vmatpush.msrb.mxu0 %v288_v21  ;;  %315 = vmatpush.msra.mxu1 %v314_v46 }
  0x3a   : > { %370 = vmatpush.msra.mxu2 %v329_v36  ;;  %404 = vmatmul.f32.vlgmr.msra.gmra.mxu3 %v271_v48 }
  0x3b   : > { %423 = vmatpush.msrb.mxu0 %v294_v22  ;;  %321 = vmatpush.msra.mxu1 %v320_v49 }
  0x3c   : > { %373 = vmatmul.f32.vlgmr.msra.gmra.mxu2 %v270_v45  ;;  %274 = vmatmul.f32.vlgmr.msra.gmra.mxu0 %v273_v53 }
  0x3d   : > { %427 = vmatpush.msrb.mxu0 %v300_v23  ;;  %327 = vmatpush.msra.mxu1 %v326_v52 }
  0x3f   : > { %431 = vmatpush.msrb.mxu0 %v306_v25  ;;  %333 = vmatpush.msra.mxu1 %v332_v54 }
  0x40   : > { %335 = vmatmul.f32.vlgmr.msra.gmra.mxu1 %v269_v41 }
  0x41   : > { %462 = vmatpush.msrb.mxu1 %v1176_v3  ;;  %435 = vmatpush.msrb.mxu0 %v312_v30 }
  0x43   : > { %464 = vmatpush.msrb.mxu1 %v1178_v4  ;;  %439 = vmatpush.msrb.mxu0 %v318_v31 }
  0x45   : > { %466 = vmatpush.msrb.mxu1 %v1180_v5  ;;  %443 = vmatpush.msrb.mxu0 %v324_v39 }
  0x47   : > { %468 = vmatpush.msrb.mxu1 %v1182_v9  ;;  %447 = vmatpush.msrb.mxu0 %v330_v44 }
  0x48   : > { %449 = vmatmul.f32.vlgmr.msrb.gmra.mxu0 %v269_v41 }
  0x49   : > { %470 = vmatpush.msrb.mxu1 %v1184_v10 }
  0x4b   : > { %472 = vmatpush.msrb.mxu1 %v1186_v11 }
  0x4d   : > { %474 = vmatpush.msrb.mxu1 %v1197_v17 }
  0x4f   : > { %476 = vmatpush.msrb.mxu1 %v1211_v24 }
  0x50   : > { %478 = vmatmul.f32.vlgmr.msrb.gmra.mxu1 %v269_v41 }
  0xb9   : > { %v275_v55 = vpop.f32.mrf.mxu0 }
  0xbd   : > { %v336_v56 = vpop.f32.mrf.mxu1  ;;  %v405_v60 = vpop.f32.mrf.mxu3 }
  0xbe   : > { %v337_v57 = vadd.f32 %v336_v56, %v275_v55 }
  0xbf   : > { %v374_v58 = vpop.f32.mrf.mxu2 }
  0xc0   : > { %v375_v59 = vadd.f32 %v374_v58, %v337_v57 }
  0xc2   : > { %v406_v62 = vadd.f32 %v405_v60, %v375_v59 }
  0xc5   : > { %v450_v63 = vpop.f32.mrf.mxu0 }
  0xc6   : > { %v451_v1 = vadd.f32 %v450_v63, %v406_v62  ;;  %v606_v62 = vld [vmem:[%s1271_s19] sm:$0x1] }
  0xcd   : > { %v479_v2 = vpop.f32.mrf.mxu1 }
  0xce   : > { %v480_v3 = vadd.f32 %v479_v2, %v451_v1 }
  0xd0   : > { %v487_v4 = vsel %vm484_vm1, %v480_v3, -inf }
  0xd1   : > { %488 = vmax.xlane.f32.xlu0 %v487_v4 }
 0x144   : > { %v489_v5 = vpop.xlane.xlu0 %488 }
 0x145   : > { %v490_v6 = vsub.f32 %v487_v4, %v489_v5 }
 0x147   : > { %v491_v7 = vmul.f32 1.442695, %v490_v6 }
 0x149   : > { %858 = vpow2.f32 %v491_v7 }
 0x14f   : > { %v1255_v8 = vpop.eup %858 }
 0x150   : > { %510 = vmax.xlane.f32.xlu0 %v1255_v8 }
 0x1c3   : > { %v1258_v9 = vpop.xlane.xlu0 %510 }
 0x1c4   : > { %vm512_vm2 = vcmp.eq.f32.partialorder %v1255_v8, %v1258_v9 }
 0x1c5   : > { %v513_v10 = vsel %vm512_vm2, %v483_v0, 128 }
 0x1c6   : > { %v515_v11 = vshra.s32 %v513_v10, 16  ;;  %v514_v13 = vand.u32 65535, %v513_v10 }
 0x1c8   : > { %v517_v12 = vcvt.s32.f32 %v515_v11  ;;  %v516_v15 = vcvt.s32.f32 %v514_v13 }
 0x1ca   : > { %518 = vmin.xlane.f32.xlu1 %v517_v12 }
 0x23d   : > { %v519_v14 = vpop.xlane.xlu1 %518 }
 0x23e   : > { %vm520_vm3 = vcmp.eq.f32.partialorder %v517_v12, %v519_v14  ;;  %v525_v17 = vcvt.f32.s32 %v519_v14 }
 0x23f   : > { %v521_v16 = vsel %vm520_vm3, %v516_v15, inf }
 0x240   : > { %522 = vmin.xlane.f32.xlu1 %v521_v16  ;;  %v526_v19 = vshll.u32 %v525_v17, 16 }
 0x2b3   : > { %v523_v18 = vpop.xlane.xlu1 %522 }
 0x2b4   : > { %v524_v20 = vcvt.f32.s32 %v523_v18 }
 0x2b6   : > { %v1262_v21 = vadd.s32 %v526_v19, %v524_v20 }
 0x2b8   : > { %vm528_vm4 = vcmp.eq.s32.totalorder %v483_v0, %v1262_v21 }
 0x2b9   : > { %v529_v22 = vsel %vm528_vm4, -1.0, %v1255_v8 }
 0x2ba   : > { %530 = vmax.xlane.f32.xlu2 %v529_v22 }
 0x32d   : > { %v531_v23 = vpop.xlane.xlu2 %530 }
 0x32e   : > { %vm532_vm5 = vcmp.eq.f32.partialorder %v529_v22, %v531_v23  ;;  %v569_v51 = vsel %vm568_vm10, %v1258_v9, %v531_v23 }
 0x32f   : > { %v533_v24 = vsel %vm532_vm5, %v483_v0, 128 }
 0x330   : > { %v535_v25 = vshra.s32 %v533_v24, 16  ;;  %v534_v27 = vand.u32 65535, %v533_v24 }
 0x332   : > { %v537_v26 = vcvt.s32.f32 %v535_v25  ;;  %v536_v29 = vcvt.s32.f32 %v534_v27 }
 0x334   : > { %538 = vmin.xlane.f32.xlu2 %v537_v26 }
 0x3a7   : > { %v539_v28 = vpop.xlane.xlu2 %538 }
 0x3a8   : > { %vm540_vm6 = vcmp.eq.f32.partialorder %v537_v26, %v539_v28  ;;  %v545_v31 = vcvt.f32.s32 %v539_v28 }
 0x3a9   : > { %v541_v30 = vsel %vm540_vm6, %v536_v29, inf }
 0x3aa   : > { %542 = vmin.xlane.f32.xlu0 %v541_v30  ;;  %v546_v33 = vshll.u32 %v545_v31, 16 }
 0x41d   : > { %v543_v32 = vpop.xlane.xlu0 %542 }
 0x41e   : > { %v544_v34 = vcvt.f32.s32 %v543_v32 }
 0x420   : > { %v1266_v35 = vadd.s32 %v546_v33, %v544_v34 }
 0x422   : > { %vm548_vm7 = vcmp.eq.s32.totalorder %v483_v0, %v1266_v35 }
 0x423   : > { %v549_v36 = vsel %vm548_vm7, -1.0, %v529_v22 }
 0x424   : > { %550 = vmax.xlane.f32.xlu1 %v549_v36 }
 0x42c   : > { %493 = vadd.xlane.f32.xlu1 %v1255_v8 }
 0x497   : > { %v551_v37 = vpop.xlane.xlu1 %550 }
 0x498   : > { %vm552_vm8 = vcmp.eq.f32.partialorder %v549_v36, %v551_v37  ;;  %v571_v53 = vsel %vm570_vm11, %v569_v51, %v551_v37 }
 0x499   : > { %v553_v39 = vsel %vm552_vm8, %v483_v0, 128 }
 0x49a   : > { %v555_v40 = vshra.s32 %v553_v39, 16  ;;  %v554_v1 = vand.u32 65535, %v553_v39 }
 0x49c   : > { %v557_v41 = vcvt.s32.f32 %v555_v40  ;;  %v556_v3 = vcvt.s32.f32 %v554_v1 }
 0x49e   : > { %558 = vmin.xlane.f32.xlu2 %v557_v41 }
 0x49f   : > { %v494_v42 = vpop.xlane.xlu1 %493 }
 0x4a0   : > { %860 = vrcp.f32 %v494_v42  ;;  %v506_v46 = vand.u32 2147483648, %v494_v42  ;;  %v504_v48 = vand.u32 2147483647, %v494_v42  ;;  %vm500_vm12 = vweird.f32 %v494_v42 }
 0x4a2   : > { %v507_v50 = vor.u32 1.1754944e-38, %v506_v46  ;;  %vm505_vm14 = vcmp.eq.f32.partialorder %v504_v48, 8.507059e+37 }
 0x4a6   : > { %v861_v43 = vpop.eup %860 }
 0x4a7   : > { %v496_v44 = vmul.f32 %v861_v43, %v494_v42  ;;  %vm501_vm9 = vweird.f32 %v861_v43 }
 0x4a8   : > { %vm502_vm13 = vmor %vm500_vm12, %vm501_vm9 }
 0x4a9   : > { %v497_v45 = vsub.f32 1.0, %v496_v44 }
 0x4ab   : > { %v498_v47 = vmul.f32 %v861_v43, %v497_v45 }
 0x4ad   : > { %v499_v49 = vadd.f32 %v861_v43, %v498_v47 }
 0x4af   : > { %v503_v52 = vsel %vm502_vm13, %v861_v43, %v499_v49 }
 0x4b0   : > { %v508_v54 = vsel %vm505_vm14, %v507_v50, %v503_v52 }
 0x4b1   : > { %v572_v55 = vmul.f32 %v571_v53, %v508_v54  ;;  %v584_v56 = vmul.f32 %v1255_v8, %v508_v54 }
 0x4b3   : > { %v595_v57 = vrot.slane %v584_v56, 4 }
 0x4b5   : > { %v596_v58 = vadd.f32 %v595_v57, %v584_v56 }
 0x4b7   : > { %v597_v59 = vrot.slane %v596_v58, 2 }
 0x4b9   : > { %v598_v60 = vadd.f32 %v597_v59, %v596_v58 }
 0x4bb   : > { %v599_v61 = vrot.slane %v598_v60, 1 }
 0x4bd   : > { %v600_v63 = vadd.f32 %v599_v61, %v598_v60 }
 0x4bf   : > { %v607_v0 = vadd.f32 %v606_v62, %v600_v63 }
 0x4c1   : > { %608 = vst [vmem:[%s1271_s19] sm:$0x1] %v607_v0 }
 0x511   : > { %v559_v2 = vpop.xlane.xlu2 %558 }
 0x512   : > { %vm560_vm15 = vcmp.eq.f32.partialorder %v557_v41, %v559_v2 }
 0x513   : > { %v561_v4 = vsel %vm560_vm15, %v556_v3, inf }
 0x514   : > { %562 = vmin.xlane.f32.xlu0 %v561_v4 }
 0x515   : > { %949 = shalt.err (!%p946_p13)
}
 0x516   : > { %783 = dma.vmem_to_hbm [thread:$0]  (%p1138_p4), %s641_s10, 16, %s643_s20, %s615_s21   ;;  %v565_v5 = vcvt.f32.s32 %v559_v2  ;;  %v573_v10 = vsel %vm568_vm10, %v1262_v21, %v1266_v35  ;;  %vm580_vm0 = vcmask 23552   ;;  %vm582_vm1 = vcmask 48128  }
 0x517   : > { %s1046_s11 = smov 3   ;;  %s773_s19 = sshll.u32 %s1032_s15, 3 }
 0x518   : > { %v566_v7 = vshll.u32 %v565_v5, 16  ;;  %s625_s5 = scalar_lea.hbm %s1342_s2, %s773_s19  ;;  %s225_s10 = scalar_lea.vmem [#allocation7], %s769_s30 }
 0x519   : > { %s627_s20 = sshll.u32 %s225_s10, 4  ;;  %s629_s21 = sshll.u32 %s625_s5, 4  ;;  %s628_s20 = int_to_ptr.vmem [resolvable:$true] %s627_s20  ;;  %s630_s21 = int_to_ptr.hbm [resolvable:$true] %s629_s21 }
 0x51a   : > { %s610_s22 = scalar_lea.sflag [#allocation4], %s1160_s28  ;;  %s964_s18 = sshra.s32 %s630_s21, 4  ;;  %s965_s18 = int_to_ptr.hbm [resolvable:$true] %s964_s18 }
 0x51b   : > { %s966_s15 = scalar_lea.hbm %s965_s18, 8  ;;  %s970_s30 = scalar_lea.hbm %s1342_s2, 16 }
 0x51c   : > { %p967_p0 = scmp.ne.s32.totalorder %s965_s18, %s966_s15  ;;  %p971_p8 = scmp.lt.s32.totalorder %s965_s18, %s1342_s2 }
 0x51d   : > { %p972_p1 = scmp.lt.s32.totalorder %s970_s30, %s966_s15 }
 0x51e   : > { %p968_p2 = pnand %p967_p0, %p1138_p4 }
 0x51f   : > { %p973_p3 = por %p972_p1, %p971_p8 }
 0x520   : > { %p969_p5 = pneg %p968_p2 }
 0x522   : > { %p974_p9 = pnand %p973_p3, %p969_p5 }
 0x587   : > { %v563_v6 = vpop.xlane.xlu0 %562 }
 0x588   : > { %v564_v8 = vcvt.f32.s32 %v563_v6 }
 0x58a   : > { %v567_v9 = vadd.s32 %v566_v7, %v564_v8 }
 0x58c   : > { %v574_v11 = vsel %vm570_vm11, %v573_v10, %v567_v9 }
 0x58d   : > { %v575_v12 = vcvt.s32.f32 %v574_v11 }
 0x58f   : > { %577 = vrot.lane.b32.xlu2 %v575_v12, %s1046_s11 }
 0x5e9   : > { %v578_v13 = vpop.permute.xlu2 %577 }
 0x5ea   : > { %v581_v14 = vsel %vm580_vm0, %v572_v55, %v578_v13 }
 0x5eb   : > { %v583_v15 = vsel %vm582_vm1, %v581_v14, 0.0 }
 0x5ec   : > { %585 = vst [vmem:[%s225_s10] sm:$0xff] %v583_v15 }
 0x5ed   : > { %977 = shalt.err (!%p974_p9)
}
 0x5ee   : > { %782 = dma.vmem_to_hbm [thread:$0]  (%p1138_p4), %s628_s20, 128, %s630_s21, %s610_s22  }
 0x5ef PF: > { %s654_s28 = sand.u32 1, %s1020_s12   ;;  %p795_p10 = pnand %p765_p6, %p1146_p7 }
 0x5f0   : > { %s655_s6 = scalar_lea.sflag [#allocation4], %s654_s28 }
 0x5f1   : > { %p796_p11 = pneg %p795_p10 }
 0x5f3   : > { %1011 = dma.done.wait (%p796_p11), %s655_s6, 128  }
 0x5f4   : > { %1013 = vsyncadd (%p796_p11), %s655_s6, 4294967168  ;;  %s665_s11 = scalar_lea.sflag [#allocation9], %s654_s28 }
 0x5f5   : > { %1015 = dma.done.wait (%p796_p11), %s665_s11, 16  }
 0x5f6   : > { %1017 = vsyncadd (%p796_p11), %s665_s11, 4294967280  ;;  %s24_s17 = sadd.s32 1, %s1040_s17   ;;  %s1350_s12 = smov %s1024_s13 }
 0x5f7   : > { %p21_p12 = scmp.ge.s32.totalorder %s24_s17, 4   ;;  %s1351_s13 = smov %s1028_s14 }
 0x5f8   : > { %s1352_s14 = smov %s1144_s8  ;;  %s1353_s15 = smov %s1036_s16 }
 0x5f9   : > { %s1354_s16 = smov %s1356_s29  ;;  %23 = sbr.rel (!%p21_p12) target bundleno = 9 (0x9), region = 98 }
 0x5fe   :  { %670 = vsyncpa [#allocation3], 1 }
 0x5ff   :  { %672 = vsyncpa [#allocation3 + $0x1], 1 }
 0x600   :  { %673 = vsyncpa [#allocation6], 1 }
 0x601   :  { %674 = vsyncpa [#allocation4], 1 }
 0x602   :  { %676 = vsyncpa [#allocation4 + $0x1], 1 }
 0x603   :  { %677 = vsyncpa [#allocation9], 1 }
 0x604   :  { %679 = vsyncpa [#allocation9 + $0x1], 1 }

</bundles_post_ra>
